<compile_context>
chip_gen: v5e
topology: v5e:2x2
jax: 0.10.0
libtpu: 0.0.40
codegen_flags: <defaults>
</compile_context>

<pallas_src>
import jax
import jax.numpy as jnp
from jax.experimental import pallas as pl
from jax.experimental.pallas import tpu as pltpu


def _round_up(x, m):
    return (x + m - 1) // m * m


def _policy_kernel(x_ref, w1_ref, b1_ref, w2_ref, b2_ref, w3_ref, b3_ref, o_ref):
    # Matmuls accumulate in f32 on the MXU; bias add + ReLU run in f32 on the VPU.
    # Hidden activations are cast to the weight dtype (bf16 by default) only for
    # the next MXU pass.
    cdt = w1_ref.dtype
    h1 = jnp.dot(x_ref[...], w1_ref[...], preferred_element_type=jnp.float32)
    h1 = jnp.maximum(h1 + b1_ref[...], 0.0)
    h2 = jnp.dot(h1.astype(cdt), w2_ref[...], preferred_element_type=jnp.float32)
    h2 = jnp.maximum(h2 + b2_ref[...], 0.0)
    out = jnp.dot(h2.astype(cdt), w3_ref[...], preferred_element_type=jnp.float32)
    o_ref[...] = (out + b3_ref[...]).astype(o_ref.dtype)


def policy_forward(state, params, *, block_b=1024, compute_dtype=jnp.bfloat16):
    """Fused 3-layer MLP forward (PolicyNetwork.forward).

    state : [B, input_dims] (or [input_dims]) f32
    params: dict of (w1,b1,w2,b2,w3,b3); weights stored [in, out], biases [1, out].
    Returns [B, n_actions] (or [n_actions]) f32 logits.
    """
    squeeze = state.ndim == 1
    if squeeze:  # single observation, like nn.Linear on a 1-D tensor
        state = state[None, :]

    w1, b1 = params["w1"], params["b1"]
    w2, b2 = params["w2"], params["b2"]
    w3, b3 = params["w3"], params["b3"]

    B, in_dim = state.shape
    hidden = w1.shape[1]
    n_actions = w3.shape[1]

    # Batch tile: big enough to amortize per-grid-step overhead and fill the MXU
    # M dim, but never larger than the (8-aligned) batch so tiny batches don't
    # pay for padding compute.
    tb = min(block_b, _round_up(B, 8))
    b_pad = _round_up(B, tb)

    # bf16 inputs -> bf16 MXU passes + halved per-step state DMA traffic.
    # Biases and accumulation stay f32.
    x = state.astype(compute_dtype)
    if b_pad != B:
        x = jnp.pad(x, ((0, b_pad - B), (0, 0)))
    w1c, w2c, w3c = (w.astype(compute_dtype) for w in (w1, w2, w3))
    b1f, b2f, b3f = (b.astype(jnp.float32) for b in (b1, b2, b3))

    dsize = jnp.dtype(compute_dtype).itemsize
    weight_elems = in_dim * hidden + hidden * hidden + hidden * n_actions
    cost = pl.CostEstimate(
        flops=2 * b_pad * weight_elems,
        transcendentals=0,
        bytes_accessed=(b_pad * in_dim * dsize           # state in
                        + b_pad * n_actions * 4          # logits out (f32)
                        + weight_elems * dsize           # weights (loaded once)
                        + (2 * hidden + n_actions) * 4), # biases (f32)
    )

    # Weights/biases: full-array blocks with a constant index_map -> fetched once,
    # VMEM-resident across every grid step.
    resident = lambda arr: pl.BlockSpec(arr.shape, lambda i: (0, 0))

    out = pl.pallas_call(
        _policy_kernel,
        out_shape=jax.ShapeDtypeStruct((b_pad, n_actions), jnp.float32),
        grid=(b_pad // tb,),
        in_specs=[
            pl.BlockSpec((tb, in_dim), lambda i: (i, 0)),
            resident(w1c), resident(b1f),
            resident(w2c), resident(b2f),
            resident(w3c), resident(b3f),
        ],
        out_specs=pl.BlockSpec((tb, n_actions), lambda i: (i, 0)),
        compiler_params=pltpu.CompilerParams(
            dimension_semantics=("parallel",),   # shards batch tiles over v7x's 2 TCs
        ),
        cost_estimate=cost,
    )(x, w1c, b1f, w2c, b2f, w3c, b3f)

    if b_pad != B:
        out = out[:B]
    return out[0] if squeeze else out


def init_params(key, input_dims, n_actions, hidden=128):
    """Deterministic init mirroring PyTorch nn.Linear default:
    U(-1/sqrt(fan_in), 1/sqrt(fan_in)) for both weights and biases."""
    def linear(k, fan_in, fan_out):
        kw, kb = jax.random.split(k)
        bound = 1.0 / jnp.sqrt(fan_in)
        # stored as [in, out] so the kernel computes x @ W
        w = jax.random.uniform(kw, (fan_in, fan_out), jnp.float32, -bound, bound)
        b = jax.random.uniform(kb, (1, fan_out), jnp.float32, -bound, bound)
        return w, b

    k1, k2, k3 = jax.random.split(key, 3)
    w1, b1 = linear(k1, input_dims, hidden)
    w2, b2 = linear(k2, hidden, hidden)
    w3, b3 = linear(k3, hidden, n_actions)
    return {"w1": w1, "b1": b1, "w2": w2, "b2": b2, "w3": w3, "b3": b3}


def policy_forward_ref(state, params):
    """Pure-JAX f32 reference for verification."""
    h1 = jnp.maximum(state @ params["w1"] + params["b1"], 0.0)
    h2 = jnp.maximum(h1 @ params["w2"] + params["b2"], 0.0)
    return h2 @ params["w3"] + params["b3"]


if __name__ == "__main__":
    key = jax.random.PRNGKey(0)
    k_params, k_state = jax.random.split(key)

    input_dims = 8     # observation size (*input_dims in the PyTorch module)
    n_actions = 4
    params = init_params(k_params, input_dims, n_actions)

    # Small sanity batch (B=8) and an uneven batch (B=300) to exercise tiling + padding.
    for batch in (8, 300):
        state = jax.random.normal(
            jax.random.fold_in(k_state, batch), (batch, input_dims), jnp.float32)
        ref = policy_forward_ref(state, params)

        # default (optimized) bf16 path: loose tolerance vs f32 reference
        out_bf16 = jax.block_until_ready(
            policy_forward(state, params, block_b=256, compute_dtype=jnp.bfloat16))
        assert out_bf16.shape == (batch, n_actions)
        assert jnp.allclose(out_bf16, ref, atol=5e-2, rtol=5e-2), "bf16 mismatch vs reference"

        # f32 path: tight tolerance
        out_f32 = jax.block_until_ready(
            policy_forward(state, params, block_b=256, compute_dtype=jnp.float32))
        assert out_f32.shape == (batch, n_actions)
        assert jnp.allclose(out_f32, ref, atol=1e-5, rtol=1e-5), "f32 mismatch vs reference"

    # Single-observation path (what choose_action does in REINFORCE): 1-D state.
    single = jax.random.normal(jax.random.fold_in(k_state, 1), (input_dims,), jnp.float32)
    out_single = jax.block_until_ready(
        policy_forward(single, params, compute_dtype=jnp.float32))
    ref_single = policy_forward_ref(single[None, :], params)[0]
    assert out_single.shape == (n_actions,)
    assert jnp.allclose(out_single, ref_single, atol=1e-5, rtol=1e-5), "1-D state mismatch"

    print("KERNEL_OK")
</pallas_src>

<mosaic_0001>
module attributes {stable_mosaic.version = 11 : i64} {
  func.func @_policy_kernel(%arg0: i32, %arg1: memref<8x8xbf16, #tpu.memory_space<vmem>>, %arg2: memref<8x128xbf16, #tpu.memory_space<vmem>>, %arg3: memref<1x128xf32, #tpu.memory_space<vmem>>, %arg4: memref<128x128xbf16, #tpu.memory_space<vmem>>, %arg5: memref<1x128xf32, #tpu.memory_space<vmem>>, %arg6: memref<128x4xbf16, #tpu.memory_space<vmem>>, %arg7: memref<1x4xf32, #tpu.memory_space<vmem>>, %arg8: memref<8x4xf32, #tpu.memory_space<vmem>>) attributes {dimension_semantics = [#tpu.dimension_semantics<parallel>], iteration_bounds = array<i64: 1>, scalar_prefetch = 0 : i64, scratch_operands = 0 : i64, tpu.core_type = #tpu.core_type<tc>, window_params = [{transform_indices = @transform_0, window_bounds = array<i64: 8, 8>}, {pipeline_mode = #tpu.pipeline_mode<synchronous>, transform_indices = @transform_1, window_bounds = array<i64: 8, 128>}, {pipeline_mode = #tpu.pipeline_mode<synchronous>, transform_indices = @transform_2, window_bounds = array<i64: 1, 128>}, {pipeline_mode = #tpu.pipeline_mode<synchronous>, transform_indices = @transform_3, window_bounds = array<i64: 128, 128>}, {pipeline_mode = #tpu.pipeline_mode<synchronous>, transform_indices = @transform_4, window_bounds = array<i64: 1, 128>}, {pipeline_mode = #tpu.pipeline_mode<synchronous>, transform_indices = @transform_5, window_bounds = array<i64: 128, 4>}, {pipeline_mode = #tpu.pipeline_mode<synchronous>, transform_indices = @transform_6, window_bounds = array<i64: 1, 4>}, {transform_indices = @transform_7, window_bounds = array<i64: 8, 4>}]} {
    %c0 = arith.constant 0 : index
    %c0_0 = arith.constant 0 : index
    %0 = vector.load %arg1[%c0, %c0_0] : memref<8x8xbf16, #tpu.memory_space<vmem>>, vector<8x8xbf16>
    %c0_1 = arith.constant 0 : index
    %c0_2 = arith.constant 0 : index
    %1 = vector.load %arg2[%c0_1, %c0_2] : memref<8x128xbf16, #tpu.memory_space<vmem>>, vector<8x128xbf16>
    %cst = arith.constant dense<0.000000e+00> : vector<8x128xf32>
    %2 = tpu.matmul %0, %1, %cst {dimension_numbers = #tpu.dot_dimension_numbers<[1], [0], [0], [1], [0, 0, 1, 1], [], []>} : vector<8x8xbf16>, vector<8x128xbf16>, vector<8x128xf32> -> vector<8x128xf32>
    %c0_3 = arith.constant 0 : index
    %c0_4 = arith.constant 0 : index
    %3 = vector.load %arg3[%c0_3, %c0_4] : memref<1x128xf32, #tpu.memory_space<vmem>>, vector<1x128xf32>
    %4 = vector.broadcast %3 : vector<1x128xf32> to vector<8x128xf32>
    %5 = arith.addf %2, %4 : vector<8x128xf32>
    %cst_5 = arith.constant 0.000000e+00 : f32
    %6 = vector.broadcast %cst_5 : f32 to vector<8x128xf32>
    %7 = arith.maximumf %5, %6 : vector<8x128xf32>
    %8 = arith.truncf %7 : vector<8x128xf32> to vector<8x128xbf16>
    %c0_6 = arith.constant 0 : index
    %c0_7 = arith.constant 0 : index
    %9 = vector.load %arg4[%c0_6, %c0_7] : memref<128x128xbf16, #tpu.memory_space<vmem>>, vector<128x128xbf16>
    %cst_8 = arith.constant dense<0.000000e+00> : vector<8x128xf32>
    %10 = tpu.matmul %8, %9, %cst_8 {dimension_numbers = #tpu.dot_dimension_numbers<[1], [0], [0], [1], [0, 0, 1, 1], [], []>} : vector<8x128xbf16>, vector<128x128xbf16>, vector<8x128xf32> -> vector<8x128xf32>
    %c0_9 = arith.constant 0 : index
    %c0_10 = arith.constant 0 : index
    %11 = vector.load %arg5[%c0_9, %c0_10] : memref<1x128xf32, #tpu.memory_space<vmem>>, vector<1x128xf32>
    %12 = vector.broadcast %11 : vector<1x128xf32> to vector<8x128xf32>
    %13 = arith.addf %10, %12 : vector<8x128xf32>
    %cst_11 = arith.constant 0.000000e+00 : f32
    %14 = vector.broadcast %cst_11 : f32 to vector<8x128xf32>
    %15 = arith.maximumf %13, %14 : vector<8x128xf32>
    %16 = arith.truncf %15 : vector<8x128xf32> to vector<8x128xbf16>
    %c0_12 = arith.constant 0 : index
    %c0_13 = arith.constant 0 : index
    %17 = vector.load %arg6[%c0_12, %c0_13] : memref<128x4xbf16, #tpu.memory_space<vmem>>, vector<128x4xbf16>
    %cst_14 = arith.constant dense<0.000000e+00> : vector<8x4xf32>
    %18 = tpu.matmul %16, %17, %cst_14 {dimension_numbers = #tpu.dot_dimension_numbers<[1], [0], [0], [1], [0, 0, 1, 1], [], []>} : vector<8x128xbf16>, vector<128x4xbf16>, vector<8x4xf32> -> vector<8x4xf32>
    %c0_15 = arith.constant 0 : index
    %c0_16 = arith.constant 0 : index
    %19 = vector.load %arg7[%c0_15, %c0_16] : memref<1x4xf32, #tpu.memory_space<vmem>>, vector<1x4xf32>
    %20 = vector.broadcast %19 : vector<1x4xf32> to vector<8x4xf32>
    %21 = arith.addf %18, %20 : vector<8x4xf32>
    %c0_17 = arith.constant 0 : index
    %c0_18 = arith.constant 0 : index
    %22 = vector.load %arg8[%c0_17, %c0_18] : memref<8x4xf32, #tpu.memory_space<vmem>>, vector<8x4xf32>
    tpu.vector_store %arg8[%c0_17, %c0_18], %21 {strides = array<i32>} : memref<8x4xf32, #tpu.memory_space<vmem>>, vector<8x4xf32>,
    return
  }
  func.func @transform_0(%arg0: i32) -> (i32, i32) {
    %c0_i32 = arith.constant 0 : i32
    %c0_i32_0 = arith.constant 0 : i32
    return %arg0, %c0_i32 : i32, i32
  }
  func.func @transform_1(%arg0: i32) -> (i32, i32) {
    %c0_i32 = arith.constant 0 : i32
    %c0_i32_0 = arith.constant 0 : i32
    %c0_i32_1 = arith.constant 0 : i32
    return %c0_i32, %c0_i32_0 : i32, i32
  }
  func.func @transform_2(%arg0: i32) -> (i32, i32) {
    %c0_i32 = arith.constant 0 : i32
    %c0_i32_0 = arith.constant 0 : i32
    %c0_i32_1 = arith.constant 0 : i32
    return %c0_i32, %c0_i32_0 : i32, i32
  }
  func.func @transform_3(%arg0: i32) -> (i32, i32) {
    %c0_i32 = arith.constant 0 : i32
    %c0_i32_0 = arith.constant 0 : i32
    %c0_i32_1 = arith.constant 0 : i32
    return %c0_i32, %c0_i32_0 : i32, i32
  }
  func.func @transform_4(%arg0: i32) -> (i32, i32) {
    %c0_i32 = arith.constant 0 : i32
    %c0_i32_0 = arith.constant 0 : i32
    %c0_i32_1 = arith.constant 0 : i32
    return %c0_i32, %c0_i32_0 : i32, i32
  }
  func.func @transform_5(%arg0: i32) -> (i32, i32) {
    %c0_i32 = arith.constant 0 : i32
    %c0_i32_0 = arith.constant 0 : i32
    %c0_i32_1 = arith.constant 0 : i32
    return %c0_i32, %c0_i32_0 : i32, i32
  }
  func.func @transform_6(%arg0: i32) -> (i32, i32) {
    %c0_i32 = arith.constant 0 : i32
    %c0_i32_0 = arith.constant 0 : i32
    %c0_i32_1 = arith.constant 0 : i32
    return %c0_i32, %c0_i32_0 : i32, i32
  }
  func.func @transform_7(%arg0: i32) -> (i32, i32) {
    %c0_i32 = arith.constant 0 : i32
    %c0_i32_0 = arith.constant 0 : i32
    return %arg0, %c0_i32 : i32, i32
  }
}

</mosaic_0001>

<bundles_post_ra>
// kernel: tpu_custom_call.1
= control target key start
LH: loop header
LB: loop body
LE: loop exit
PB: predicated region body
PF: predicated region fallthrough
CT: control target
= control target key end

     0   :  { %12 = vsyncpa [#allocation3], 0  ;;  %s541_s0 = inlined_call_operand.vmem [shape: bf16[8,8], index: 0, kind: input, shape index: {}]   ;;  %s542_s1 = inlined_call_operand.hbm [shape: bf16[8,128], index: 1, kind: input, shape index: {}]   ;;  %s543_s2 = inlined_call_operand.hbm [shape: f32[1,128], index: 2, kind: input, shape index: {}]   ;;  %s544_s3 = inlined_call_operand.vmem [shape: bf16[128,128], index: 3, kind: input, shape index: {}]   ;;  %s545_s4 = inlined_call_operand.hbm [shape: f32[1,128], index: 4, kind: input, shape index: {}]   ;;  %s546_s5 = inlined_call_operand.vmem [shape: bf16[128,4], index: 5, kind: input, shape index: {}]   ;;  %s547_s6 = inlined_call_operand.vmem [shape: f32[1,4], index: 6, kind: input, shape index: {}]   ;;  %s548_s7 = inlined_call_operand.vmem [shape: f32[8,4], index: 7, kind: output, shape index: {}]  }
   0x1   :  { %13 = vsyncpa [#allocation5], 0  ;;  %s32_s26 = sshll.u32 %s543_s2, 4  ;;  %s432_s27 = smov [#allocation4]   ;;  %s33_s26 = int_to_ptr.hbm [resolvable:$true] %s32_s26 }
   0x2   :  { %s34_s28 = sshll.u32 %s432_s27, 4  ;;  %s21_s8 = sshll.u32 %s542_s1, 4  ;;  %s35_s28 = int_to_ptr.vmem [resolvable:$true] %s34_s28  ;;  %s22_s8 = int_to_ptr.hbm [resolvable:$true] %s21_s8 }
   0x3   :  { %37 = dma.hbm_to_vmem [thread:$0]  %s33_s26, 16, %s35_s28, [#allocation5]  }
   0x4   :  { %s433_s9 = smov [#allocation2]   ;;  %s45_s13 = sshll.u32 %s545_s4, 4  ;;  %s46_s13 = int_to_ptr.hbm [resolvable:$true] %s45_s13 }
   0x5   :  { %s23_s10 = sshll.u32 %s433_s9, 4  ;;  %s434_s2 = smov [#allocation6]   ;;  %s24_s10 = int_to_ptr.vmem [resolvable:$true] %s23_s10 }
   0x6   :  { %26 = dma.hbm_to_vmem [thread:$0]  %s22_s8, 64, %s24_s10, [#allocation3]  }
   0x7   :  { %s47_s14 = sshll.u32 %s434_s2, 4  ;;  %s48_s14 = int_to_ptr.vmem [resolvable:$true] %s47_s14 }
   0x8   :  { %50 = dma.hbm_to_vmem [thread:$0]  %s46_s13, 16, %s48_s14, [#allocation5]  }
   0x9   :  { %428 = dma.done.wait [#allocation3], 64  }
   0xa   :  { %429 = vsyncadd [#allocation3], 4294967232 }
   0xb   :  { %430 = dma.done.wait [#allocation5], 32  }
   0xc   :  { %431 = vsyncadd [#allocation5], 4294967264  ;;  %vm78_vm0 = vcmask 1043456   ;;  %v69_v0 = vld [vmem:[#allocation2] sm:$0xf]  ;;  %v341_v1 = vld [vmem:[%s544_s3 + $0x38] sm:$0xff] }
   0xd   :  { %v80_v2 = vsel %vm78_vm0, %v69_v0, 0  ;;  %v68_v3 = vld [vmem:[%s541_s0] sm:$0xf]  ;;  %vm74_vm1 = vcmask 64512   ;;  %165 = vmatpush.bf16.msra.mxu1 %v341_v1  ;;  %v340_v4 = vld [vmem:[%s544_s3 + $0x30] sm:$0xff]  ;;  %v339_v5 = vld [vmem:[%s544_s3 + $0x28] sm:$0xff] }
   0xe   :  { %89 = vmatpush.bf16.msra.mxu0 %v80_v2  ;;  %v338_v6 = vld [vmem:[%s544_s3 + $0x20] sm:$0xff]  ;;  %v337_v7 = vld [vmem:[%s544_s3 + $0x18] sm:$0xff]  ;;  %v336_v8 = vld [vmem:[%s544_s3 + $0x10] sm:$0xff]  ;;  %vm261_vm2 = vcmask 31744  }
   0xf   :  { %v335_v9 = vld [vmem:[%s544_s3 + $0x8] sm:$0xff]  ;;  %v334_v10 = vld [vmem:[%s544_s3] sm:$0xff]  ;;  %v349_v11 = vld [vmem:[%s546_s5 + $0x38] sm:$0xff] }
  0x10   :  { %248 = vmatpush.bf16.msra.mxu2 %v349_v11  ;;  %v348_v12 = vld [vmem:[%s546_s5 + $0x30] sm:$0xff]  ;;  %v347_v13 = vld [vmem:[%s546_s5 + $0x28] sm:$0xff]  ;;  %v346_v14 = vld [vmem:[%s546_s5 + $0x20] sm:$0xff] }
  0x11   :  { %269 = vmatmul.msk.bf16.vlgmr.msra.gmra.mxu0 %vm74_vm1, %v68_v3  ;;  %166 = vmatpush.bf16.msra.mxu1 %v340_v4  ;;  %v345_v15 = vld [vmem:[%s546_s5 + $0x18] sm:$0xff]  ;;  %v344_v16 = vld [vmem:[%s546_s5 + $0x10] sm:$0xff]  ;;  %v353_v17 = vld [vmem:[#allocation4] ss:$0 sm:$0xff] }
  0x12   :  { %v343_v23 = vld [vmem:[%s546_s5 + $0x8] sm:$0xff]  ;;  %v342_v24 = vld [vmem:[%s546_s5] sm:$0xff] }
  0x13   :  { %v354_v25 = vld [vmem:[#allocation6] ss:$0 sm:$0xff]  ;;  %v355_v31 = vld [vmem:[%s547_s6] ss:$0 sm:$0xff] }
  0x14   :  { %249 = vmatpush.bf16.msra.mxu2 %v348_v12 }
  0x15   :  { %167 = vmatpush.bf16.msra.mxu1 %v339_v5 }
  0x18   :  { %250 = vmatpush.bf16.msra.mxu2 %v347_v13 }
  0x19   :  { %168 = vmatpush.bf16.msra.mxu1 %v338_v6 }
  0x1c   :  { %251 = vmatpush.bf16.msra.mxu2 %v346_v14 }
  0x1d   :  { %169 = vmatpush.bf16.msra.mxu1 %v337_v7 }
  0x20   :  { %252 = vmatpush.bf16.msra.mxu2 %v345_v15 }
  0x21   :  { %170 = vmatpush.bf16.msra.mxu1 %v336_v8 }
  0x24   :  { %253 = vmatpush.bf16.msra.mxu2 %v344_v16 }
  0x25   :  { %171 = vmatpush.bf16.msra.mxu1 %v335_v9 }
  0x28   :  { %254 = vmatpush.bf16.msra.mxu2 %v343_v23 }
  0x29   :  { %172 = vmatpush.bf16.msra.mxu1 %v334_v10 }
  0x2c   :  { %255 = vmatpush.bf16.msra.mxu2 %v342_v24 }
  0x8e   :  { %v91_v18 = vpop.f32.mrf.mxu0 }
  0x8f   :  { %v92_v19 = vadd.f32 %v353_v17, %v91_v18 }
  0x91   :  { %v95_v20 = vmax.f32 %v92_v19, 0.0 }
  0x93   :  { %v96_v21 = vpack.c.bf16 %v95_v20, %v95_v20 }
  0x95   :  { %173 = vmatmul.bf16.vlgmr.msra.gmra.mxu1 %v96_v21 }
  0x96   :  { %v93_v22 = vpop.f32.mrf.mxu0 }
 0x112   :  { %v174_v26 = vpop.f32.mrf.mxu1 }
 0x113   :  { %v175_v27 = vadd.f32 %v354_v25, %v174_v26 }
 0x115   :  { %v178_v28 = vmax.f32 %v175_v27, 0.0 }
 0x117   :  { %v179_v29 = vpack.c.bf16 %v178_v28, %v178_v28 }
 0x119   :  { %256 = vmatmul.bf16.vlgmr.msra.gmra.mxu2 %v179_v29 }
 0x11a   :  { %v176_v30 = vpop.f32.mrf.mxu1 }
 0x19c   :  { %v257_v32 = vpop.f32.mrf.mxu2 }
 0x19d   :  { %v258_v33 = vadd.f32 %v355_v31, %v257_v32 }
 0x19f   :  { %262 = vst.msk [vmem:[%s548_s7] sm:$0xff] %vm261_vm2, %v258_v33 }
 0x1a4   :  { %v259_v34 = vpop.f32.mrf.mxu2 }
 0x1a5   :  { %267 = vsyncpa [#allocation3], 1 }
 0x1a6   :  { %268 = vsyncpa [#allocation5], 1 }

</bundles_post_ra>
